<compile_context>
chip_gen: v6e
topology: v6e:2x2x1
jax: 0.10.0
libtpu: 0.0.40
codegen_flags: <defaults>
</compile_context>

<pallas_src>
import functools

import jax
import jax.numpy as jnp
from jax.experimental import pallas as pl
from jax.experimental.pallas import tpu as pltpu


def outer_ffn_kernel(inp1_ref, inp2_ref, w1r_ref, w1a_ref, w1c_ref, b1_ref,
                     w2_ref, b2_ref, o_ref, *, n_neurons, i_chunk):
    """Fused outer-product + 2-layer MLP (ReLU) forward for one batch tile.

    inp1_ref: (BT, d1)        raw inp1 tile (compute dtype)
    inp2_ref: (BT, d2)        raw inp2 tile (compute dtype)
    w1r_ref : (d2, d1*N)      core W1, transposed/reshaped (compute dtype)
    w1a_ref : (d1, N)         W1[:d1, d2, :]   (compute dtype)
    w1c_ref : (d2, N)         W1[d1, :d2, :]   (compute dtype)
    b1_ref  : (1, N)          b1 + W1[d1, d2, :]   (f32)
    w2_ref  : (N, N)          second linear weight (compute dtype)
    b2_ref  : (1, N)          (f32)
    o_ref   : (BT, N)         f32 output tile
    """
    n = n_neurons
    x1 = inp1_ref[...]                       # (BT, d1)
    x2 = inp2_ref[...]                       # (BT, d2)
    d1 = x1.shape[1]

    # Analytic "appended ones" corrections (small K=d1/K=d2 matmuls, f32 acc).
    acc = jnp.dot(x1, w1a_ref[...], preferred_element_type=jnp.float32)
    acc = acc + jnp.dot(x2, w1c_ref[...], preferred_element_type=jnp.float32)

    # Core term: acc[b, :] += sum_{i,j} x1[b,i] * x2[b,j] * W1[i,j,:]
    # One wide MXU matmul per i-chunk (K = d2 exactly, N_out = i_chunk*N),
    # then a per-column FMA over static 128-aligned lane slices of P.
    num_chunks = d1 // i_chunk
    for c in range(num_chunks):
        col0 = c * i_chunk * n
        p = jnp.dot(x2, w1r_ref[:, col0:col0 + i_chunk * n],
                    preferred_element_type=jnp.float32)      # (BT, i_chunk*N)
        partial = jnp.zeros_like(acc)
        for ii in range(i_chunk):
            i = c * i_chunk + ii
            partial = partial + (x1[:, i:i + 1].astype(jnp.float32)
                                 * p[:, ii * n:(ii + 1) * n])
        acc = acc + partial

    h1 = jnp.maximum(acc + b1_ref[...], 0.0)                              # ReLU
    h2 = jnp.dot(h1.astype(w2_ref.dtype), w2_ref[...],
                 preferred_element_type=jnp.float32) + b2_ref[...]
    o_ref[...] = jnp.maximum(h2, 0.0).astype(o_ref.dtype)                 # ReLU


def _pick_batch_tile(batch):
    # Cap at 128 rows: keeps the per-chunk FMA working set within the 64-vreg
    # budget while still giving the grid enough steps for pipelining/megacore.
    for bt in (128, 64, 32, 16, 8):
        if batch % bt == 0:
            return bt
    return batch  # small/odd batch -> single full tile


def _pick_i_chunk(d1, n):
    # Bound the (BT, i_chunk*N) matmul temporary while keeping the MXU output
    # width wide (>= 256 lanes) and lane slices 128-aligned.
    if d1 * n <= 4096:
        return d1
    for ic in (16, 32, 8, 64, 4, 2):
        if d1 % ic == 0 and (ic * n) % 128 == 0:
            return ic
    return d1


def outer_forward(inp1, inp2, w1_flat, b1, w2, b2,
                  *, compute_dtype=jnp.bfloat16):
    """Fused Pallas forward for `Outer`.

    inp1: (B, d1), inp2: (B, d2)
    w1_flat: ((d1+1)*(d2+1), N)  -- transposed vs. PyTorch nn.Linear
    b1: (N,), w2: (N, N), b2: (N,)
    """
    B, d1 = inp1.shape
    _, d2 = inp2.shape
    F, N = w1_flat.shape
    assert F == (d1 + 1) * (d2 + 1)
    assert w2.shape == (N, N)

    # Split W1 so the appended-ones columns are handled analytically.
    w1_3d = w1_flat.reshape(d1 + 1, d2 + 1, N)
    w1_core = w1_3d[:d1, :d2, :]                                   # (d1, d2, N)
    w1r = jnp.transpose(w1_core, (1, 0, 2)).reshape(d2, d1 * N)    # (d2, d1*N)
    w1a = w1_3d[:d1, d2, :]                                        # (d1, N)
    w1c = w1_3d[d1, :d2, :]                                        # (d2, N)
    b1_eff = (b1 + w1_3d[d1, d2, :]).reshape(1, N).astype(jnp.float32)
    b2_2d = b2.reshape(1, N).astype(jnp.float32)

    cd = compute_dtype
    x1 = inp1.astype(cd)
    x2 = inp2.astype(cd)
    w1r = w1r.astype(cd)
    w1a = w1a.astype(cd)
    w1c = w1c.astype(cd)
    w2c = w2.astype(cd)

    bt = _pick_batch_tile(B)
    ic = _pick_i_chunk(d1, N)
    nb = B // bt

    # Explicit VMEM budget (resident weights + double-buffered activation
    # tiles + matmul temporaries); clamp so it is safe on v5e/v6e/v7x.
    isz = jnp.dtype(cd).itemsize
    est = ((w1r.size + w1a.size + w1c.size + w2c.size) * isz
           + (b1_eff.size + b2_2d.size) * 4
           + 2 * 2 * (bt * d1 + bt * d2) * isz       # double-buffered inputs
           + 2 * bt * N * 4                          # double-buffered output
           + 2 * bt * ic * N * 4                     # P chunk temporaries
           + (4 << 20))                              # headroom
    vmem_limit = int(min(max(est, 32 << 20), 56 << 20))

    kernel = functools.partial(outer_ffn_kernel, n_neurons=N, i_chunk=ic)

    return pl.pallas_call(
        kernel,
        out_shape=jax.ShapeDtypeStruct((B, N), jnp.float32),
        grid_spec=pltpu.PrefetchScalarGridSpec(
            num_scalar_prefetch=0,
            grid=(nb,),
            in_specs=[
                pl.BlockSpec((bt, d1), lambda b: (b, 0)),        # inp1 tile
                pl.BlockSpec((bt, d2), lambda b: (b, 0)),        # inp2 tile
                pl.BlockSpec((d2, d1 * N), lambda b: (0, 0)),    # W1r (resident)
                pl.BlockSpec((d1, N), lambda b: (0, 0)),         # W1a (resident)
                pl.BlockSpec((d2, N), lambda b: (0, 0)),         # W1c (resident)
                pl.BlockSpec((1, N), lambda b: (0, 0)),          # b1_eff
                pl.BlockSpec((N, N), lambda b: (0, 0)),          # W2 (resident)
                pl.BlockSpec((1, N), lambda b: (0, 0)),          # b2
            ],
            out_specs=pl.BlockSpec((bt, N), lambda b: (b, 0)),
        ),
        compiler_params=pltpu.CompilerParams(
            dimension_semantics=("parallel",),
            vmem_limit_bytes=vmem_limit,
        ),
    )(x1, x2, w1r, w1a, w1c, b1_eff, w2c, b2_2d)


def reference_forward(inp1, inp2, w1_flat, b1, w2, b2):
    """Pure-JAX f32 reference reproducing the PyTorch semantics exactly."""
    B = inp1.shape[0]
    ones = jnp.ones((B, 1), dtype=inp1.dtype)
    a = jnp.concatenate([inp1, ones], axis=-1)
    c = jnp.concatenate([inp2, ones], axis=-1)
    fusion = jnp.einsum('bi,bj->bij', a, c).reshape(B, -1)
    h1 = jnp.maximum(fusion @ w1_flat + b1, 0.0)
    return jnp.maximum(h1 @ w2 + b2, 0.0)


if __name__ == "__main__":
    # Small shapes consistent with the module (defaults are 128/128/128);
    # inp1_size != inp2_size on purpose to exercise the reshape/transpose order.
    batch = 8
    inp1_size = 16
    inp2_size = 24
    n_neurons = 32
    F = (inp1_size + 1) * (inp2_size + 1)

    key = jax.random.PRNGKey(0)
    k1, k2, k3, k4, k5, k6 = jax.random.split(key, 6)

    inp1 = jax.random.normal(k1, (batch, inp1_size), dtype=jnp.float32)
    inp2 = jax.random.normal(k2, (batch, inp2_size), dtype=jnp.float32)

    # Synthetic parameters, stored as (in, out) (transposed vs. PyTorch).
    w1_flat = jax.random.normal(k3, (F, n_neurons), dtype=jnp.float32) * 0.05
    b1 = jax.random.normal(k4, (n_neurons,), dtype=jnp.float32) * 0.05
    w2 = jax.random.normal(k5, (n_neurons, n_neurons), dtype=jnp.float32) * 0.05
    b2 = jax.random.normal(k6, (n_neurons,), dtype=jnp.float32) * 0.05

    ref = reference_forward(inp1, inp2, w1_flat, b1, w2, b2)

    # Exact-precision path (f32 MXU operands): must match reference tightly.
    out_f32 = outer_forward(inp1, inp2, w1_flat, b1, w2, b2,
                            compute_dtype=jnp.float32)
    out_f32 = jax.block_until_ready(out_f32)
    assert out_f32.shape == (batch, n_neurons)
    assert jnp.allclose(out_f32, ref, atol=1e-4, rtol=1e-4), "f32 mismatch vs. reference"

    # Default fast path (bf16 MXU operands, f32 accumulation).
    out_bf16 = outer_forward(inp1, inp2, w1_flat, b1, w2, b2)
    out_bf16 = jax.block_until_ready(out_bf16)
    assert out_bf16.shape == (batch, n_neurons)
    assert jnp.allclose(out_bf16, ref, atol=2e-2, rtol=2e-2), "bf16 mismatch vs. reference"

    print("KERNEL_OK")
</pallas_src>

<mosaic_0001>
module attributes {stable_mosaic.version = 11 : i64} {
  func.func @outer_ffn_kernel(%arg0: i32, %arg1: memref<8x16xf32, #tpu.memory_space<vmem>>, %arg2: memref<8x24xf32, #tpu.memory_space<vmem>>, %arg3: memref<24x512xf32, #tpu.memory_space<vmem>>, %arg4: memref<16x32xf32, #tpu.memory_space<vmem>>, %arg5: memref<24x32xf32, #tpu.memory_space<vmem>>, %arg6: memref<1x32xf32, #tpu.memory_space<vmem>>, %arg7: memref<32x32xf32, #tpu.memory_space<vmem>>, %arg8: memref<1x32xf32, #tpu.memory_space<vmem>>, %arg9: memref<8x32xf32, #tpu.memory_space<vmem>>) attributes {dimension_semantics = [#tpu.dimension_semantics<parallel>], iteration_bounds = array<i64: 1>, scalar_prefetch = 0 : i64, scratch_operands = 0 : i64, tpu.core_type = #tpu.core_type<tc>, window_params = [{transform_indices = @transform_0, window_bounds = array<i64: 8, 16>}, {transform_indices = @transform_1, window_bounds = array<i64: 8, 24>}, {pipeline_mode = #tpu.pipeline_mode<synchronous>, transform_indices = @transform_2, window_bounds = array<i64: 24, 512>}, {pipeline_mode = #tpu.pipeline_mode<synchronous>, transform_indices = @transform_3, window_bounds = array<i64: 16, 32>}, {pipeline_mode = #tpu.pipeline_mode<synchronous>, transform_indices = @transform_4, window_bounds = array<i64: 24, 32>}, {pipeline_mode = #tpu.pipeline_mode<synchronous>, transform_indices = @transform_5, window_bounds = array<i64: 1, 32>}, {pipeline_mode = #tpu.pipeline_mode<synchronous>, transform_indices = @transform_6, window_bounds = array<i64: 32, 32>}, {pipeline_mode = #tpu.pipeline_mode<synchronous>, transform_indices = @transform_7, window_bounds = array<i64: 1, 32>}, {transform_indices = @transform_8, window_bounds = array<i64: 8, 32>}]} {
    %c0 = arith.constant 0 : index
    %c0_0 = arith.constant 0 : index
    %0 = vector.load %arg1[%c0, %c0_0] : memref<8x16xf32, #tpu.memory_space<vmem>>, vector<8x16xf32>
    %c0_1 = arith.constant 0 : index
    %c0_2 = arith.constant 0 : index
    %1 = vector.load %arg2[%c0_1, %c0_2] : memref<8x24xf32, #tpu.memory_space<vmem>>, vector<8x24xf32>
    %c0_3 = arith.constant 0 : index
    %c0_4 = arith.constant 0 : index
    %2 = vector.load %arg4[%c0_3, %c0_4] : memref<16x32xf32, #tpu.memory_space<vmem>>, vector<16x32xf32>
    %cst = arith.constant dense<0.000000e+00> : vector<8x32xf32>
    %3 = tpu.matmul %0, %2, %cst {dimension_numbers = #tpu.dot_dimension_numbers<[1], [0], [0], [1], [0, 0, 1, 1], [], []>} : vector<8x16xf32>, vector<16x32xf32>, vector<8x32xf32> -> vector<8x32xf32>
    %c0_5 = arith.constant 0 : index
    %c0_6 = arith.constant 0 : index
    %4 = vector.load %arg5[%c0_5, %c0_6] : memref<24x32xf32, #tpu.memory_space<vmem>>, vector<24x32xf32>
    %cst_7 = arith.constant dense<0.000000e+00> : vector<8x32xf32>
    %5 = tpu.matmul %1, %4, %cst_7 {dimension_numbers = #tpu.dot_dimension_numbers<[1], [0], [0], [1], [0, 0, 1, 1], [], []>} : vector<8x24xf32>, vector<24x32xf32>, vector<8x32xf32> -> vector<8x32xf32>
    %6 = arith.addf %3, %5 : vector<8x32xf32>
    %c0_8 = arith.constant 0 : index
    %c0_9 = arith.constant 0 : index
    %7 = vector.load %arg3[%c0_8, %c0_9] : memref<24x512xf32, #tpu.memory_space<vmem>>, vector<24x512xf32>
    %cst_10 = arith.constant dense<0.000000e+00> : vector<8x512xf32>
    %8 = tpu.matmul %1, %7, %cst_10 {dimension_numbers = #tpu.dot_dimension_numbers<[1], [0], [0], [1], [0, 0, 1, 1], [], []>} : vector<8x24xf32>, vector<24x512xf32>, vector<8x512xf32> -> vector<8x512xf32>
    %cst_11 = arith.constant 0.000000e+00 : f32
    %9 = vector.broadcast %cst_11 : f32 to vector<8x32xf32>
    %10 = vector.extract_strided_slice %0 {offsets = [0, 0], sizes = [8, 1], strides = [1, 1]} : vector<8x16xf32> to vector<8x1xf32>
    %11 = vector.extract_strided_slice %8 {offsets = [0, 0], sizes = [8, 32], strides = [1, 1]} : vector<8x512xf32> to vector<8x32xf32>
    %12 = vector.broadcast %10 : vector<8x1xf32> to vector<8x32xf32>
    %13 = arith.mulf %12, %11 : vector<8x32xf32>
    %14 = arith.addf %9, %13 : vector<8x32xf32>
    %15 = vector.extract_strided_slice %0 {offsets = [0, 1], sizes = [8, 1], strides = [1, 1]} : vector<8x16xf32> to vector<8x1xf32>
    %16 = vector.extract_strided_slice %8 {offsets = [0, 32], sizes = [8, 32], strides = [1, 1]} : vector<8x512xf32> to vector<8x32xf32>
    %17 = vector.broadcast %15 : vector<8x1xf32> to vector<8x32xf32>
    %18 = arith.mulf %17, %16 : vector<8x32xf32>
    %19 = arith.addf %14, %18 : vector<8x32xf32>
    %20 = vector.extract_strided_slice %0 {offsets = [0, 2], sizes = [8, 1], strides = [1, 1]} : vector<8x16xf32> to vector<8x1xf32>
    %21 = vector.extract_strided_slice %8 {offsets = [0, 64], sizes = [8, 32], strides = [1, 1]} : vector<8x512xf32> to vector<8x32xf32>
    %22 = vector.broadcast %20 : vector<8x1xf32> to vector<8x32xf32>
    %23 = arith.mulf %22, %21 : vector<8x32xf32>
    %24 = arith.addf %19, %23 : vector<8x32xf32>
    %25 = vector.extract_strided_slice %0 {offsets = [0, 3], sizes = [8, 1], strides = [1, 1]} : vector<8x16xf32> to vector<8x1xf32>
    %26 = vector.extract_strided_slice %8 {offsets = [0, 96], sizes = [8, 32], strides = [1, 1]} : vector<8x512xf32> to vector<8x32xf32>
    %27 = vector.broadcast %25 : vector<8x1xf32> to vector<8x32xf32>
    %28 = arith.mulf %27, %26 : vector<8x32xf32>
    %29 = arith.addf %24, %28 : vector<8x32xf32>
    %30 = vector.extract_strided_slice %0 {offsets = [0, 4], sizes = [8, 1], strides = [1, 1]} : vector<8x16xf32> to vector<8x1xf32>
    %31 = vector.extract_strided_slice %8 {offsets = [0, 128], sizes = [8, 32], strides = [1, 1]} : vector<8x512xf32> to vector<8x32xf32>
    %32 = vector.broadcast %30 : vector<8x1xf32> to vector<8x32xf32>
    %33 = arith.mulf %32, %31 : vector<8x32xf32>
    %34 = arith.addf %29, %33 : vector<8x32xf32>
    %35 = vector.extract_strided_slice %0 {offsets = [0, 5], sizes = [8, 1], strides = [1, 1]} : vector<8x16xf32> to vector<8x1xf32>
    %36 = vector.extract_strided_slice %8 {offsets = [0, 160], sizes = [8, 32], strides = [1, 1]} : vector<8x512xf32> to vector<8x32xf32>
    %37 = vector.broadcast %35 : vector<8x1xf32> to vector<8x32xf32>
    %38 = arith.mulf %37, %36 : vector<8x32xf32>
    %39 = arith.addf %34, %38 : vector<8x32xf32>
    %40 = vector.extract_strided_slice %0 {offsets = [0, 6], sizes = [8, 1], strides = [1, 1]} : vector<8x16xf32> to vector<8x1xf32>
    %41 = vector.extract_strided_slice %8 {offsets = [0, 192], sizes = [8, 32], strides = [1, 1]} : vector<8x512xf32> to vector<8x32xf32>
    %42 = vector.broadcast %40 : vector<8x1xf32> to vector<8x32xf32>
    %43 = arith.mulf %42, %41 : vector<8x32xf32>
    %44 = arith.addf %39, %43 : vector<8x32xf32>
    %45 = vector.extract_strided_slice %0 {offsets = [0, 7], sizes = [8, 1], strides = [1, 1]} : vector<8x16xf32> to vector<8x1xf32>
    %46 = vector.extract_strided_slice %8 {offsets = [0, 224], sizes = [8, 32], strides = [1, 1]} : vector<8x512xf32> to vector<8x32xf32>
    %47 = vector.broadcast %45 : vector<8x1xf32> to vector<8x32xf32>
    %48 = arith.mulf %47, %46 : vector<8x32xf32>
    %49 = arith.addf %44, %48 : vector<8x32xf32>
    %50 = vector.extract_strided_slice %0 {offsets = [0, 8], sizes = [8, 1], strides = [1, 1]} : vector<8x16xf32> to vector<8x1xf32>
    %51 = vector.extract_strided_slice %8 {offsets = [0, 256], sizes = [8, 32], strides = [1, 1]} : vector<8x512xf32> to vector<8x32xf32>
    %52 = vector.broadcast %50 : vector<8x1xf32> to vector<8x32xf32>
    %53 = arith.mulf %52, %51 : vector<8x32xf32>
    %54 = arith.addf %49, %53 : vector<8x32xf32>
    %55 = vector.extract_strided_slice %0 {offsets = [0, 9], sizes = [8, 1], strides = [1, 1]} : vector<8x16xf32> to vector<8x1xf32>
    %56 = vector.extract_strided_slice %8 {offsets = [0, 288], sizes = [8, 32], strides = [1, 1]} : vector<8x512xf32> to vector<8x32xf32>
    %57 = vector.broadcast %55 : vector<8x1xf32> to vector<8x32xf32>
    %58 = arith.mulf %57, %56 : vector<8x32xf32>
    %59 = arith.addf %54, %58 : vector<8x32xf32>
    %60 = vector.extract_strided_slice %0 {offsets = [0, 10], sizes = [8, 1], strides = [1, 1]} : vector<8x16xf32> to vector<8x1xf32>
    %61 = vector.extract_strided_slice %8 {offsets = [0, 320], sizes = [8, 32], strides = [1, 1]} : vector<8x512xf32> to vector<8x32xf32>
    %62 = vector.broadcast %60 : vector<8x1xf32> to vector<8x32xf32>
    %63 = arith.mulf %62, %61 : vector<8x32xf32>
    %64 = arith.addf %59, %63 : vector<8x32xf32>
    %65 = vector.extract_strided_slice %0 {offsets = [0, 11], sizes = [8, 1], strides = [1, 1]} : vector<8x16xf32> to vector<8x1xf32>
    %66 = vector.extract_strided_slice %8 {offsets = [0, 352], sizes = [8, 32], strides = [1, 1]} : vector<8x512xf32> to vector<8x32xf32>
    %67 = vector.broadcast %65 : vector<8x1xf32> to vector<8x32xf32>
    %68 = arith.mulf %67, %66 : vector<8x32xf32>
    %69 = arith.addf %64, %68 : vector<8x32xf32>
    %70 = vector.extract_strided_slice %0 {offsets = [0, 12], sizes = [8, 1], strides = [1, 1]} : vector<8x16xf32> to vector<8x1xf32>
    %71 = vector.extract_strided_slice %8 {offsets = [0, 384], sizes = [8, 32], strides = [1, 1]} : vector<8x512xf32> to vector<8x32xf32>
    %72 = vector.broadcast %70 : vector<8x1xf32> to vector<8x32xf32>
    %73 = arith.mulf %72, %71 : vector<8x32xf32>
    %74 = arith.addf %69, %73 : vector<8x32xf32>
    %75 = vector.extract_strided_slice %0 {offsets = [0, 13], sizes = [8, 1], strides = [1, 1]} : vector<8x16xf32> to vector<8x1xf32>
    %76 = vector.extract_strided_slice %8 {offsets = [0, 416], sizes = [8, 32], strides = [1, 1]} : vector<8x512xf32> to vector<8x32xf32>
    %77 = vector.broadcast %75 : vector<8x1xf32> to vector<8x32xf32>
    %78 = arith.mulf %77, %76 : vector<8x32xf32>
    %79 = arith.addf %74, %78 : vector<8x32xf32>
    %80 = vector.extract_strided_slice %0 {offsets = [0, 14], sizes = [8, 1], strides = [1, 1]} : vector<8x16xf32> to vector<8x1xf32>
    %81 = vector.extract_strided_slice %8 {offsets = [0, 448], sizes = [8, 32], strides = [1, 1]} : vector<8x512xf32> to vector<8x32xf32>
    %82 = vector.broadcast %80 : vector<8x1xf32> to vector<8x32xf32>
    %83 = arith.mulf %82, %81 : vector<8x32xf32>
    %84 = arith.addf %79, %83 : vector<8x32xf32>
    %85 = vector.extract_strided_slice %0 {offsets = [0, 15], sizes = [8, 1], strides = [1, 1]} : vector<8x16xf32> to vector<8x1xf32>
    %86 = vector.extract_strided_slice %8 {offsets = [0, 480], sizes = [8, 32], strides = [1, 1]} : vector<8x512xf32> to vector<8x32xf32>
    %87 = vector.broadcast %85 : vector<8x1xf32> to vector<8x32xf32>
    %88 = arith.mulf %87, %86 : vector<8x32xf32>
    %89 = arith.addf %84, %88 : vector<8x32xf32>
    %90 = arith.addf %6, %89 : vector<8x32xf32>
    %c0_12 = arith.constant 0 : index
    %c0_13 = arith.constant 0 : index
    %91 = vector.load %arg6[%c0_12, %c0_13] : memref<1x32xf32, #tpu.memory_space<vmem>>, vector<1x32xf32>
    %92 = vector.broadcast %91 : vector<1x32xf32> to vector<8x32xf32>
    %93 = arith.addf %90, %92 : vector<8x32xf32>
    %cst_14 = arith.constant 0.000000e+00 : f32
    %94 = vector.broadcast %cst_14 : f32 to vector<8x32xf32>
    %95 = arith.maximumf %93, %94 : vector<8x32xf32>
    %c0_15 = arith.constant 0 : index
    %c0_16 = arith.constant 0 : index
    %96 = vector.load %arg7[%c0_15, %c0_16] : memref<32x32xf32, #tpu.memory_space<vmem>>, vector<32x32xf32>
    %cst_17 = arith.constant dense<0.000000e+00> : vector<8x32xf32>
    %97 = tpu.matmul %95, %96, %cst_17 {dimension_numbers = #tpu.dot_dimension_numbers<[1], [0], [0], [1], [0, 0, 1, 1], [], []>} : vector<8x32xf32>, vector<32x32xf32>, vector<8x32xf32> -> vector<8x32xf32>
    %c0_18 = arith.constant 0 : index
    %c0_19 = arith.constant 0 : index
    %98 = vector.load %arg8[%c0_18, %c0_19] : memref<1x32xf32, #tpu.memory_space<vmem>>, vector<1x32xf32>
    %99 = vector.broadcast %98 : vector<1x32xf32> to vector<8x32xf32>
    %100 = arith.addf %97, %99 : vector<8x32xf32>
    %cst_20 = arith.constant 0.000000e+00 : f32
    %101 = vector.broadcast %cst_20 : f32 to vector<8x32xf32>
    %102 = arith.maximumf %100, %101 : vector<8x32xf32>
    %c0_21 = arith.constant 0 : index
    %c0_22 = arith.constant 0 : index
    %103 = vector.load %arg9[%c0_21, %c0_22] : memref<8x32xf32, #tpu.memory_space<vmem>>, vector<8x32xf32>
    tpu.vector_store %arg9[%c0_21, %c0_22], %102 {strides = array<i32>} : memref<8x32xf32, #tpu.memory_space<vmem>>, vector<8x32xf32>,
    return
  }
  func.func @transform_0(%arg0: i32) -> (i32, i32) {
    %c0_i32 = arith.constant 0 : i32
    %c0_i32_0 = arith.constant 0 : i32
    return %arg0, %c0_i32 : i32, i32
  }
  func.func @transform_1(%arg0: i32) -> (i32, i32) {
    %c0_i32 = arith.constant 0 : i32
    %c0_i32_0 = arith.constant 0 : i32
    return %arg0, %c0_i32 : i32, i32
  }
  func.func @transform_2(%arg0: i32) -> (i32, i32) {
    %c0_i32 = arith.constant 0 : i32
    %c0_i32_0 = arith.constant 0 : i32
    %c0_i32_1 = arith.constant 0 : i32
    return %c0_i32, %c0_i32_0 : i32, i32
  }
  func.func @transform_3(%arg0: i32) -> (i32, i32) {
    %c0_i32 = arith.constant 0 : i32
    %c0_i32_0 = arith.constant 0 : i32
    %c0_i32_1 = arith.constant 0 : i32
    return %c0_i32, %c0_i32_0 : i32, i32
  }
  func.func @transform_4(%arg0: i32) -> (i32, i32) {
    %c0_i32 = arith.constant 0 : i32
    %c0_i32_0 = arith.constant 0 : i32
    %c0_i32_1 = arith.constant 0 : i32
    return %c0_i32, %c0_i32_0 : i32, i32
  }
  func.func @transform_5(%arg0: i32) -> (i32, i32) {
    %c0_i32 = arith.constant 0 : i32
    %c0_i32_0 = arith.constant 0 : i32
    %c0_i32_1 = arith.constant 0 : i32
    return %c0_i32, %c0_i32_0 : i32, i32
  }
  func.func @transform_6(%arg0: i32) -> (i32, i32) {
    %c0_i32 = arith.constant 0 : i32
    %c0_i32_0 = arith.constant 0 : i32
    %c0_i32_1 = arith.constant 0 : i32
    return %c0_i32, %c0_i32_0 : i32, i32
  }
  func.func @transform_7(%arg0: i32) -> (i32, i32) {
    %c0_i32 = arith.constant 0 : i32
    %c0_i32_0 = arith.constant 0 : i32
    %c0_i32_1 = arith.constant 0 : i32
    return %c0_i32, %c0_i32_0 : i32, i32
  }
  func.func @transform_8(%arg0: i32) -> (i32, i32) {
    %c0_i32 = arith.constant 0 : i32
    %c0_i32_0 = arith.constant 0 : i32
    return %arg0, %c0_i32 : i32, i32
  }
}

</mosaic_0001>

<bundles_post_ra>
// kernel: tpu_custom_call.1
= control target key start
LH: loop header
LB: loop body
LE: loop exit
PB: predicated region body
PF: predicated region fallthrough
CT: control target
= control target key end

     0   :  { %13 = vsyncpa [#allocation3], 0  ;;  %s1086_s0 = inlined_call_operand.hbm [shape: f32[8,16], index: 0, kind: input, shape index: {}]   ;;  %s1087_s1 = inlined_call_operand.hbm [shape: f32[8,24], index: 1, kind: input, shape index: {}]   ;;  %s1088_s2 = inlined_call_operand.hbm [shape: f32[24,512], index: 2, kind: input, shape index: {}]   ;;  %s1089_s3 = inlined_call_operand.hbm [shape: f32[16,32], index: 3, kind: input, shape index: {}]   ;;  %s1090_s4 = inlined_call_operand.hbm [shape: f32[24,32], index: 4, kind: input, shape index: {}]   ;;  %s1091_s5 = inlined_call_operand.vmem [shape: f32[1,32], index: 5, kind: input, shape index: {}]   ;;  %s1092_s6 = inlined_call_operand.hbm [shape: f32[32,32], index: 6, kind: input, shape index: {}]   ;;  %s1093_s7 = inlined_call_operand.vmem [shape: f32[1,32], index: 7, kind: input, shape index: {}]   ;;  %s1094_s8 = inlined_call_operand.hbm [shape: f32[8,32], index: 8, kind: output, shape index: {}]  }
   0x1   :  { %14 = vsyncpa [#allocation6], 0 }
   0x2   :  { %15 = vsyncpa [#allocation9], 0 }
   0x3   :  { %16 = vsyncpa [#allocation12], 0 }
   0x4   :  { %17 = vsyncpa [#allocation4], 0  ;;  %s919_s27 = smov [#allocation5]   ;;  %s920_s29 = smov [#allocation8]  }
   0x5   :  { %s34_s28 = sshll.u32 %s919_s27, 4  ;;  %s55_s30 = sshll.u32 %s920_s29, 4  ;;  %s35_s28 = int_to_ptr.vmem [resolvable:$true] %s34_s28  ;;  %s56_s30 = int_to_ptr.vmem [resolvable:$true] %s55_s30 }
   0x6   :  { %s777_s9 = scalar_lea.vmem %s35_s28, 128  ;;  %p782_p1 = scmp.lt.s32.totalorder %s35_s28, %s35_s28 }
   0x7   :  { %p778_p0 = scmp.ne.s32.totalorder %s35_s28, %s777_s9  ;;  %p783_p2 = scmp.lt.s32.totalorder %s777_s9, %s777_s9 }
   0x9   :  { %p784_p3 = por %p783_p2, %p782_p1 }
   0xb   :  { %p785_p4 = pnand %p784_p3, %p778_p0 }
   0xd   :  { %788 = shalt.err (!%p785_p4)
}
   0xe   :  { %37 = dma.hbm_to_vmem [thread:$0]  %s1087_s1, 128, %s35_s28, [#allocation6]  }
   0xf   :  { %s797_s12 = scalar_lea.vmem %s56_s30, 256  ;;  %p802_p6 = scmp.lt.s32.totalorder %s56_s30, %s56_s30 }
  0x10   :  { %p798_p5 = scmp.ne.s32.totalorder %s56_s30, %s797_s12  ;;  %p803_p7 = scmp.lt.s32.totalorder %s797_s12, %s797_s12 }
  0x12   :  { %p804_p8 = por %p803_p7, %p802_p6 }
  0x14   :  { %p805_p9 = pnand %p804_p8, %p798_p5 }
  0x16   :  { %808 = shalt.err (!%p805_p9)
}
  0x17   :  { %s921_s13 = smov 128   ;;  %s922_s14 = smov 8  }
  0x18   :  { %61 = dma.hbm_to_vmem [thread:$0]  %s1089_s3, 256, %s56_s30, [#allocation9], %s921_s13, %s921_s13, %s922_s14  }
  0x19   :  { %s923_s17 = smov [#allocation2]   ;;  %s924_s19 = smov [#allocation7]  }
  0x1a   :  { %s24_s18 = sshll.u32 %s923_s17, 4  ;;  %s43_s1 = sshll.u32 %s924_s19, 4  ;;  %s25_s18 = int_to_ptr.vmem [resolvable:$true] %s24_s18  ;;  %s44_s1 = int_to_ptr.vmem [resolvable:$true] %s43_s1 }
  0x1b   :  { %s817_s20 = scalar_lea.vmem %s25_s18, 128  ;;  %p822_p11 = scmp.lt.s32.totalorder %s25_s18, %s25_s18 }
  0x1c   :  { %p818_p10 = scmp.ne.s32.totalorder %s25_s18, %s817_s20  ;;  %p823_p12 = scmp.lt.s32.totalorder %s817_s20, %s817_s20 }
  0x1e   :  { %p824_p13 = por %p823_p12, %p822_p11 }
  0x20   :  { %p825_p0 = pnand %p824_p13, %p818_p10 }
  0x22   :  { %828 = shalt.err (!%p825_p0)
}
  0x23   :  { %27 = dma.hbm_to_vmem [thread:$0]  %s1086_s0, 128, %s25_s18, [#allocation3]  }
  0x24   :  { %s837_s23 = scalar_lea.vmem %s44_s1, 1536  ;;  %p842_p2 = scmp.lt.s32.totalorder %s44_s1, %s44_s1 }
  0x25   :  { %p838_p1 = scmp.ne.s32.totalorder %s44_s1, %s837_s23  ;;  %p843_p3 = scmp.lt.s32.totalorder %s837_s23, %s837_s23 }
  0x27   :  { %p844_p4 = por %p843_p3, %p842_p2 }
  0x29   :  { %p845_p5 = pnand %p844_p4, %p838_p1 }
  0x2b   :  { %848 = shalt.err (!%p845_p5)
}
  0x2c   :  { %s925_s3 = smov 512   ;;  %s926_s24 = smov 32  }
  0x2d   :  { %49 = dma.hbm_to_vmem [thread:$0]  %s1088_s2, 1536, %s44_s1, [#allocation6], %s925_s3, %s925_s3, %s926_s24  }
  0x2e   :  { %s927_s27 = smov [#allocation10]   ;;  %s928_s29 = smov [#allocation11]  }
  0x2f   :  { %s67_s28 = sshll.u32 %s927_s27, 4  ;;  %s81_s30 = sshll.u32 %s928_s29, 4  ;;  %s68_s28 = int_to_ptr.vmem [resolvable:$true] %s67_s28  ;;  %s82_s30 = int_to_ptr.vmem [resolvable:$true] %s81_s30 }
  0x30   :  { %s857_s0 = scalar_lea.vmem %s68_s28, 384  ;;  %p862_p7 = scmp.lt.s32.totalorder %s68_s28, %s68_s28 }
  0x31   :  { %p858_p6 = scmp.ne.s32.totalorder %s68_s28, %s857_s0  ;;  %p863_p8 = scmp.lt.s32.totalorder %s857_s0, %s857_s0 }
  0x33   :  { %p864_p9 = por %p863_p8, %p862_p7 }
  0x35   :  { %p865_p10 = pnand %p864_p9, %p858_p6 }
  0x37   :  { %868 = shalt.err (!%p865_p10)
}
  0x38   :  { %73 = dma.hbm_to_vmem [thread:$0]  %s1090_s4, 384, %s68_s28, [#allocation9], %s921_s13, %s921_s13, %s922_s14  }
  0x39   :  { %s877_s2 = scalar_lea.vmem %s82_s30, 512  ;;  %p882_p12 = scmp.lt.s32.totalorder %s82_s30, %s82_s30 }
  0x3a   :  { %p878_p11 = scmp.ne.s32.totalorder %s82_s30, %s877_s2  ;;  %p883_p13 = scmp.lt.s32.totalorder %s877_s2, %s877_s2 }
  0x3c   :  { %p884_p0 = por %p883_p13, %p882_p12 }
  0x3e   :  { %p885_p1 = pnand %p884_p0, %p878_p11 }
  0x40   :  { %888 = shalt.err (!%p885_p1)
}
  0x41   :  { %87 = dma.hbm_to_vmem [thread:$0]  %s1092_s6, 512, %s82_s30, [#allocation12], %s921_s13, %s921_s13, %s922_s14  }
  0x42   :  { %909 = dma.done.wait [#allocation3], 128  }
  0x43   :  { %910 = vsyncadd [#allocation3], 4294967168 }
  0x44   :  { %911 = dma.done.wait [#allocation6], 1664  }
  0x45   :  { %912 = vsyncadd [#allocation6], 4294965632 }
  0x46   :  { %913 = dma.done.wait [#allocation9], 640  }
  0x47   :  { %914 = vsyncadd [#allocation9], 4294966656 }
  0x48   :  { %915 = dma.done.wait [#allocation12], 512  }
  0x49   :  { %916 = vsyncadd [#allocation12], 4294966784  ;;  %v929_v0 = vmov 0.0   ;;  %vm930_vm0 = vmmov 0   ;;  %v931_v1 = vmov 3   ;;  %v932_v2 = vmov 1  }
  0x4a   :  { %339 = vmatprep.mubr.f32.mxu1 %v929_v0  ;;  %695 = vmatprep.subr.mxu0 %v929_v0  ;;  %v272_v3 = vld [vmem:[#allocation7 + $0x48] sm:$0xff]  ;;  %v271_v4 = vld [vmem:[#allocation7 + $0x40] sm:$0xff]  ;;  %v113_v9 = vld [vmem:[#allocation10 + $0x8] sm:$0xff]  ;;  %vm115_vm1 = vcmask 195584   ;;  %vm189_vm2 = vcmask 130048   ;;  %v933_v22 = vmov 5  }
  0x4b   :  { %701 = vmatprep.mubr.msk.f32.mxu0 %vm930_vm0, %v929_v0  ;;  %755 = vset.pattern.permute.xlu1 %v931_v1  ;;  %v268_v5 = vld [vmem:[#allocation7 + $0x28] sm:$0xff]  ;;  %v267_v6 = vld [vmem:[#allocation7 + $0x20] sm:$0xff]  ;;  %v109_v11 = vld [vmem:[#allocation5] sm:$0xff]  ;;  %v934_v23 = vmov 2   ;;  %v935_v24 = vmov 6   ;;  %v936_v25 = vmov 7  }
  0x4c   :  { %753 = vset.pattern.permute.xlu0 %v932_v2  ;;  %301 = vmatprep.subr.mxu1 %v272_v3  ;;  %v264_v7 = vld [vmem:[#allocation7 + $0x8] sm:$0xff]  ;;  %v114_v8 = vld [vmem:[#allocation10 + $0x10] sm:$0xff]  ;;  %v112_v12 = vld [vmem:[#allocation10] sm:$0xff]  ;;  %v937_v26 = vmov 9   ;;  %v938_v27 = vmov 11   ;;  %v939_v28 = vmov 10  }
  0x4d   :  { %302 = vmatpush1.msra.mxu1 %v271_v4  ;;  %v263_v10 = vld [vmem:[#allocation7] sm:$0xff]  ;;  %696 = vmatpush3.msra.mxu0 %v114_v8  ;;  %v111_v13 = vld [vmem:[#allocation8 + $0x8] sm:$0xff]  ;;  %v274_v15 = vld [vmem:[#allocation7 + $0x58] sm:$0xff]  ;;  %v940_v29 = vmov 15   ;;  %v941_v30 = vmov 13   ;;  %v942_v31 = vmov 14  }
  0x4e   :  { %303 = vmatprep.subr.mxu1 %v268_v5  ;;  %697 = vmatprep.subr.mxu0 %v929_v0  ;;  %v110_v14 = vld [vmem:[#allocation8] sm:$0xff]  ;;  %v1034_v16 = vld [vmem:[#allocation2] sm:$0xff]  ;;  %v270_v18 = vld [vmem:[#allocation7 + $0x38] sm:$0xff]  ;;  %v943_v32 = vmov 0   ;;  %v944_v33 = vmov 4   ;;  %v945_v34 = vmov 8  }
  0x4f   :  { %304 = vmatpush1.msra.mxu1 %v267_v6  ;;  %698 = vmatpush3.msra.mxu0 %v113_v9  ;;  %v273_v17 = vld [vmem:[#allocation7 + $0x50] sm:$0xff]  ;;  %v266_v20 = vld [vmem:[#allocation7 + $0x18] sm:$0xff]  ;;  %s946_s4 = smov 96   ;;  %s947_s6 = smov 64   ;;  %v948_v55 = vmov 12   ;;  %v574_v6 = vld [vmem:[#allocation11 + $0x18] sm:$0xff] }
  0x50   :  { %305 = vmatprep.subr.mxu1 %v264_v7  ;;  %699 = vmatprep.subr.mxu0 %v929_v0  ;;  %v269_v19 = vld [vmem:[#allocation7 + $0x30] sm:$0xff]  ;;  %v573_v7 = vld [vmem:[#allocation11 + $0x10] sm:$0xff]  ;;  %v571_v9 = vld [vmem:[#allocation11] sm:$0xff]  ;;  %vm582_vm3 = vcmask 261120   ;;  %s949_s17 = smov [#allocation13]  }
  0x51   :  { %306 = vmatpush1.msra.mxu1 %v263_v10  ;;  %700 = vmatpush3.msra.mxu0 %v112_v12  ;;  %v265_v21 = vld [vmem:[#allocation7 + $0x10] sm:$0xff]  ;;  %s664_s18 = sshll.u32 %s949_s17, 4  ;;  %s665_s18 = int_to_ptr.vmem [resolvable:$true] %s664_s18 }
  0x52   :  { %678 = vmatmul.mubr.msk.f32.vlgmr.msra.gmra.mxu1 %vm115_vm1, %v109_v11  ;;  %704 = vmatprep.subr.mxu0 %v929_v0  ;;  %v572_v8 = vld [vmem:[#allocation11 + $0x8] sm:$0xff]  ;;  %s889_s19 = scalar_lea.vmem %s665_s18, 128  ;;  %p894_p3 = scmp.lt.s32.totalorder %s665_s18, %s665_s18 }
  0x53   :  { %702 = vmatmul.mubr.msk.f32.vlgmr.msra.gmra.mxu0 %vm115_vm1, %v109_v11  ;;  %444 = vperm.xlu1 %755, %v1034_v16   ;;  %p890_p2 = scmp.ne.s32.totalorder %s665_s18, %s889_s19  ;;  %p895_p4 = scmp.lt.s32.totalorder %s889_s19, %s889_s19 }
  0x54   :  { %705 = vmatpush3.msra.mxu0 %v111_v13  ;;  %708 = vmatprep.mubr.msk.f32.mxu0 %vm930_vm0, %v929_v0 }
  0x55   :  { %706 = vmatprep.subr.mxu0 %v929_v0  ;;  %424 = vperm.xlu0 %753, %v1034_v16   ;;  %p896_p5 = por %p895_p4, %p894_p3 }
  0x56   :  { %707 = vmatpush3.msra.mxu0 %v110_v14  ;;  %711 = vmatprep.subr.mxu1 %v929_v0 }
  0x57   :  { %372 = vmatprep.subr.mxu0 %v274_v15  ;;  %709 = vmatmul.mubr.msk.f32.vlgmr.msra.gmra.mxu0 %vm189_vm2, %v1034_v16  ;;  %p897_p6 = pnand %p896_p5, %p890_p2 }
  0x58   :  { %373 = vmatpush1.msra.mxu0 %v273_v17  ;;  %410 = vmatprep.mubr.f32.mxu0 %v929_v0 }
  0x59   :  { %374 = vmatprep.subr.mxu0 %v270_v18  ;;  %756 = vset.pattern.permute.xlu1 %v933_v22 }
  0x5a   :  { %375 = vmatpush1.msra.mxu0 %v269_v19  ;;  %460 = vperm.xlu1 %756, %v1034_v16  }
  0x5b   :  { %376 = vmatprep.subr.mxu0 %v266_v20  ;;  %754 = vset.pattern.permute.xlu0 %v934_v23 }
  0x5c   :  { %377 = vmatpush1.msra.mxu0 %v265_v21  ;;  %434 = vperm.xlu0 %754, %v1034_v16  }
  0x5d   :  { %679 = vmatmul.mubr.msk.f32.vlgmr.msra.gmra.mxu0 %vm115_vm1, %v109_v11  ;;  %719 = vmatprep.mubr.msk.f32.mxu1 %vm930_vm0, %v929_v0 }
  0x5e   :  { %757 = vset.pattern.permute.xlu1 %v935_v24  ;;  %712 = vmatpush3.msra.mxu1 %v574_v6 }
  0x5f   :  { %470 = vperm.xlu1 %757, %v1034_v16   ;;  %713 = vmatprep.subr.mxu1 %v929_v0 }
  0x60   :  { %758 = vset.pattern.permute.xlu0 %v936_v25  ;;  %714 = vmatpush3.msra.mxu1 %v573_v7 }
  0x61   :  { %480 = vperm.xlu0 %758, %v1034_v16   ;;  %715 = vmatprep.subr.mxu1 %v929_v0 }
  0x62   :  { %716 = vmatpush3.msra.mxu1 %v572_v8 }
  0x63   :  { %759 = vset.pattern.permute.xlu1 %v937_v26  ;;  %717 = vmatprep.subr.mxu1 %v929_v0 }
  0x64   :  { %496 = vperm.xlu1 %759, %v1034_v16   ;;  %718 = vmatpush3.msra.mxu1 %v571_v9 }
  0x65   :  { %761 = vset.pattern.permute.xlu0 %v938_v27 }
  0x66   :  { %516 = vperm.xlu0 %761, %v1034_v16  }
  0x68   :  { %760 = vset.pattern.permute.xlu1 %v939_v28 }
  0x69   :  { %506 = vperm.xlu1 %760, %v1034_v16  }
  0x6a   :  { %764 = vset.pattern.permute.xlu0 %v940_v29 }
  0x6b   :  { %552 = vperm.xlu0 %764, %v1034_v16  }
  0x6d   :  { %762 = vset.pattern.permute.xlu1 %v941_v30 }
  0x6e   :  { %532 = vperm.xlu1 %762, %v1034_v16  }
  0x72   :  { %763 = vset.pattern.permute.xlu1 %v942_v31 }
  0x73   :  { %542 = vperm.xlu1 %763, %v1034_v16  }
  0x77   :  { %765 = vset.pattern.permute.xlu1 %v943_v32 }
  0x78   :  { %418 = vperm.xlu1 %765, %v1034_v16  }
  0x7c   :  { %766 = vset.pattern.permute.xlu1 %v944_v33 }
  0x7d   :  { %454 = vperm.xlu1 %766, %v1034_v16  }
  0x81   :  { %767 = vset.pattern.permute.xlu1 %v945_v34 }
  0xce   :  { %v445_v35 = vpop.permute.xlu1 %444 }
  0xd0   :  { %v425_v37 = vpop.permute.xlu0 %424 }
  0xd5   :  { %v461_v36 = vpop.permute.xlu1 %460 }
  0xd7   :  { %v435_v39 = vpop.permute.xlu0 %434 }
  0xda   :  { %v471_v38 = vpop.permute.xlu1 %470 }
  0xdc   :  { %v481_v54 = vpop.permute.xlu0 %480 }
  0xdf   :  { %v497_v45 = vpop.permute.xlu1 %496 }
  0xe1   :  { %v517_v58 = vpop.permute.xlu0 %516 }
  0xe4   :  { %v507_v53 = vpop.permute.xlu1 %506 }
  0xe6   :  { %v553_v2 = vpop.permute.xlu0 %552 }
  0xe9   :  { %v533_v61 = vpop.permute.xlu1 %532 }
  0xee   :  { %v543_v3 = vpop.permute.xlu1 %542 }
  0xf3   :  { %v419_v10 = vpop.permute.xlu1 %418 }
  0xf8   :  { %v455_v11 = vpop.permute.xlu1 %454 }
 0x112   :  { %v341_v40 = vpop.f32.mrf.mxu1 }
 0x113   :  { %v427_v41 = vmul.f32 %v425_v37, %v341_v40  ;;  %v437_v42 = vmul.f32 %v435_v39, %v341_v40  ;;  %v185_v43 = vpop.f32.mrf.mxu0  ;;  %v447_v46 = vmul.f32 %v445_v35, %v341_v40  ;;  %v421_v12 = vmul.f32 %v419_v10, %v341_v40 }
 0x114   :  { %v343_v48 = vpop.f32.mrf.mxu1 }
 0x115   :  { %429 = vrot.lane.b32.xlu0 %v427_v41, %s946_s4  ;;  %439 = vrot.lane.b32.xlu1 %v437_v42, %s947_s6  ;;  %v703_v44 = vpop.f32.mrf.mxu0  ;;  %v463_v51 = vmul.f32 %v461_v36, %v343_v48  ;;  %v473_v52 = vmul.f32 %v471_v38, %v343_v48  ;;  %v483_v57 = vmul.f32 %v481_v54, %v343_v48 }
 0x116   :  { %v457_v20 = vmul.f32 %v455_v11, %v343_v48  ;;  %v680_v44 = vld [vmem:[%s1091_s5] ss:$0 sm:$0xff] }
 0x117   :  { %v259_v47 = vpop.f32.mrf.mxu0  ;;  %v681_v48 = vld [vmem:[%s1093_s7] ss:$0 sm:$0xff] }
 0x118   :  { %v1059_v49 = vadd.f32 %v259_v47, %v185_v43 }
 0x119   :  { %449 = vrot.lane.b32.xlu0 %v447_v46, %s926_s24  ;;  %490 = vperm.xlu1 %767, %v1034_v16   ;;  %v710_v50 = vpop.f32.mrf.mxu0 }
 0x11d   :  { %465 = vrot.lane.b32.xlu0 %v463_v51, %s946_s4  ;;  %475 = vrot.lane.b32.xlu1 %v473_v52, %s947_s6  ;;  %v412_v56 = vpop.f32.mrf.mxu0 }
 0x11e   :  { %768 = vset.pattern.permute.xlu1 %v948_v55  ;;  %v509_v59 = vmul.f32 %v507_v53, %v412_v56  ;;  %v499_v60 = vmul.f32 %v497_v45, %v412_v56  ;;  %v519_v63 = vmul.f32 %v517_v58, %v412_v56 }
 0x11f   :  { %v414_v62 = vpop.f32.mrf.mxu0 }
 0x120   :  { %v535_v1 = vmul.f32 %v533_v61, %v414_v62  ;;  %v545_v4 = vmul.f32 %v543_v3, %v414_v62  ;;  %v555_v5 = vmul.f32 %v553_v2, %v414_v62 }
 0x121   :  { %526 = vperm.xlu1 %768, %v1034_v16   ;;  %485 = vrot.lane.b32.xlu0 %v483_v57, %s926_s24 }
 0x125   :  { %511 = vrot.lane.b32.xlu1 %v509_v59, %s947_s6  ;;  %501 = vrot.lane.b32.xlu0 %v499_v60, %s946_s4 }
 0x129   :  { %521 = vrot.lane.b32.xlu0 %v519_v63, %s926_s24  ;;  %537 = vrot.lane.b32.xlu1 %v535_v1, %s946_s4 }
 0x12d   :  { %547 = vrot.lane.b32.xlu0 %v545_v4, %s947_s6  ;;  %557 = vrot.lane.b32.xlu1 %v555_v5, %s926_s24 }
 0x187   :  { %v430_v13 = vpop.permute.xlu0 %429  ;;  %v440_v15 = vpop.permute.xlu1 %439 }
 0x188   :  { %v432_v14 = vadd.f32 %v430_v13, %v421_v12 }
 0x18a   :  { %v442_v16 = vadd.f32 %v440_v15, %v432_v14 }
 0x18b   :  { %v450_v17 = vpop.permute.xlu0 %449 }
 0x18c   :  { %v452_v18 = vadd.f32 %v450_v17, %v442_v16 }
 0x18e   :  { %v458_v21 = vadd.f32 %v457_v20, %v452_v18 }
 0x18f   :  { %v466_v19 = vpop.permute.xlu0 %465 }
 0x190   :  { %v468_v24 = vadd.f32 %v466_v19, %v458_v21 }
 0x193   :  { %v486_v23 = vpop.permute.xlu0 %485 }
 0x194   :  { %v491_v22 = vpop.permute.xlu1 %490 }
 0x195   :  { %v493_v27 = vmul.f32 %v491_v22, %v412_v56 }
 0x197   :  { %v502_v28 = vpop.permute.xlu0 %501 }
 0x198   :  { %v476_v25 = vpop.permute.xlu1 %475 }
 0x199   :  { %v478_v26 = vadd.f32 %v476_v25, %v468_v24 }
 0x19b   :  { %v488_v0 = vadd.f32 %v486_v23, %v478_v26  ;;  %v522_v34 = vpop.permute.xlu0 %521 }
 0x19c   :  { %v527_v29 = vpop.permute.xlu1 %526 }
 0x19d   :  { %v494_v30 = vadd.f32 %v493_v27, %v488_v0  ;;  %v529_v35 = vmul.f32 %v527_v29, %v414_v62 }
 0x19f   :  { %v504_v31 = vadd.f32 %v502_v28, %v494_v30  ;;  %v548_v40 = vpop.permute.xlu0 %547 }
 0x1a0   :  { %v512_v32 = vpop.permute.xlu1 %511 }
 0x1a1   :  { %v514_v33 = vadd.f32 %v512_v32, %v504_v31 }
 0x1a3   :  { %v524_v36 = vadd.f32 %v522_v34, %v514_v33 }
 0x1a4   :  { %v538_v37 = vpop.permute.xlu1 %537 }
 0x1a5   :  { %v530_v38 = vadd.f32 %v529_v35, %v524_v36 }
 0x1a7   :  { %v540_v39 = vadd.f32 %v538_v37, %v530_v38 }
 0x1a8   :  { %v558_v42 = vpop.permute.xlu1 %557 }
 0x1a9   :  { %v550_v41 = vadd.f32 %v548_v40, %v540_v39 }
 0x1ab   :  { %v560_v43 = vadd.f32 %v558_v42, %v550_v41 }
 0x1ad   :  { %v561_v45 = vadd.f32 %v560_v43, %v1059_v49 }
 0x1af   :  { %v569_v46 = vadd.f32 %v680_v44, %v561_v45 }
 0x1b1   :  { %v570_v47 = vmax.f32 %v569_v46, 0.0 }
 0x1b3   :  { %720 = vmatmul.mubr.msk.f32.vlgmr.msra.gmra.mxu1 %vm582_vm3, %v570_v47 }
 0x273   :  { %v652_v50 = vpop.f32.mrf.mxu1 }
 0x274   :  { %v653_v51 = vadd.f32 %v681_v48, %v652_v50 }
 0x275   :  { %v721_v52 = vpop.f32.mrf.mxu1 }
 0x276   :  { %v656_v53 = vmax.f32 %v653_v51, 0.0 }
 0x278   :  { %657 = vst.msk [vmem:[#allocation13] sm:$0xff] %vm582_vm3, %v656_v53 }
 0x279   :  { %900 = shalt.err (!%p897_p6)
}
 0x27a   :  { %667 = dma.vmem_to_hbm [thread:$0]  %s665_s18, 128, %s1094_s8, [#allocation4]  }
 0x27b   :  { %917 = dma.done.wait [#allocation4], 128  }
 0x27c   :  { %918 = vsyncadd [#allocation4], 4294967168 }
 0x27d   :  { %671 = vsyncpa [#allocation3], 1 }
 0x27e   :  { %672 = vsyncpa [#allocation6], 1 }
 0x27f   :  { %673 = vsyncpa [#allocation9], 1 }
 0x280   :  { %674 = vsyncpa [#allocation12], 1 }
 0x281   :  { %675 = vsyncpa [#allocation4], 1 }

</bundles_post_ra>
